<compile_context>
chip_gen: v6e
topology: v6e:2x2x1
jax: 0.10.0
libtpu: 0.0.40
codegen_flags: <defaults>
</compile_context>

<pallas_src>
import functools

import jax
import jax.numpy as jnp
from jax.experimental import pallas as pl
from jax.experimental.pallas import tpu as pltpu


_MIB = 1024 * 1024
_FUSED_SLAB_CAP = 6 * _MIB    # per-batch (C, HW) slab; ~4-5x live when buffered
_TILE_CAP = 4 * _MIB          # per-block cap for the two-pass fallback
_VMEM_LIMIT = 48 * _MIB       # explicit scoped-VMEM limit (< v7x 64 MiB phys)


# ---------------------------------------------------------------------------
# Fused kernel: max over (H*W) -> 3-tap channel conv -> sigmoid -> multiply
# ---------------------------------------------------------------------------
def _eca_fused_kernel(w_ref, x_ref, o_ref):
    # w_ref : SMEM (3,)  f32       Conv1d taps [w0, w1, w2]
    # x_ref : VMEM (1, C, HW)      one batch element, lane-dense spatial dim
    # o_ref : VMEM (1, C, HW)
    x = x_ref[0]                                              # (C, HW), native
    C = x.shape[0]
    # Max is order-preserving: reduce in native dtype, cast only the (C,1).
    m = jnp.max(x, axis=-1, keepdims=True).astype(jnp.float32)   # (C, 1)
    w0, w1, w2 = w_ref[0], w_ref[1], w_ref[2]
    # 3-tap conv along channels (sublane axis), zero-padded at the edges:
    #   z[c] = w0*m[c-1] + w1*m[c] + w2*m[c+1]
    cidx = jax.lax.broadcasted_iota(jnp.int32, m.shape, 0)
    m_prev = jnp.where(cidx == 0, 0.0, pltpu.roll(m, shift=1, axis=0))
    m_next = jnp.where(cidx == C - 1, 0.0, pltpu.roll(m, shift=C - 1, axis=0))
    z = w0 * m_prev + w1 * m + w2 * m_next                    # (C, 1) f32
    g = jax.nn.sigmoid(z)                                     # (C, 1) f32
    o_ref[0] = (x * g.astype(x.dtype)).astype(o_ref.dtype)


# ---------------------------------------------------------------------------
# Fallback Pass A: per-channel global max over spatial positions
# ---------------------------------------------------------------------------
def _eca_max_kernel(x_ref, m_ref, m_sc):
    # x_ref : VMEM (1, C, TK)       lane-dense spatial tile of one batch elem
    # m_ref : VMEM (1, C, 1) f32    per-channel max (written on last k)
    # m_sc  : VMEM (C, 1)  f32      running max (channels on sublanes)
    k = pl.program_id(1)

    @pl.when(k == 0)
    def _init():
        m_sc[...] = jnp.full(m_sc.shape, -jnp.inf, dtype=m_sc.dtype)

    # Reduce in native dtype; cast only the tiny (C, 1) result.
    tile_max = jnp.max(x_ref[0], axis=-1, keepdims=True)
    m_sc[...] = jnp.maximum(m_sc[...], tile_max.astype(jnp.float32))

    @pl.when(k == pl.num_programs(1) - 1)
    def _finalize():
        m_ref[0] = m_sc[...]


# ---------------------------------------------------------------------------
# Fallback Pass B: elementwise per-channel gating (pure HBM streaming)
# ---------------------------------------------------------------------------
def _eca_apply_kernel(x_ref, g_ref, o_ref):
    # x_ref : VMEM (TM, TN)         lane-dense tile of the (B*C, HW) view of x
    # g_ref : VMEM (TM, 1) f32      per-row (= per (b, c)) gate
    # o_ref : VMEM (TM, TN)
    o_ref[...] = (x_ref[...].astype(jnp.float32) * g_ref[...]).astype(o_ref.dtype)


def _pick_tile(total, candidates, cap=None):
    """Largest candidate dividing `total` (respecting `cap`), else `total`."""
    for c in candidates:
        if cap is not None and c > cap:
            continue
        if total % c == 0:
            return c
    return total


@functools.partial(jax.jit, static_argnames=("use_fused",))
def eca_forward(x, conv_w, *, use_fused=None):
    """ECA forward. x: (B, C, H, W); conv_w: (1, 1, 3) Conv1d weight."""
    B, C, H, W = x.shape
    HW = H * W
    itemsize = jnp.dtype(x.dtype).itemsize
    # Gate math stays in f32 regardless of x.dtype (matches PyTorch's conv).
    w = conv_w.reshape(-1).astype(jnp.float32)                 # (3,) taps

    slab_bytes = C * HW * itemsize
    if use_fused is None:
        use_fused = slab_bytes <= _FUSED_SLAB_CAP

    # ----------------------------- Fused path ------------------------------
    if use_fused:
        x3 = x.reshape(B, C, HW)                               # lane-dense
        out3 = pl.pallas_call(
            _eca_fused_kernel,
            out_shape=jax.ShapeDtypeStruct((B, C, HW), x.dtype),
            grid_spec=pltpu.PrefetchScalarGridSpec(
                num_scalar_prefetch=0,
                grid=(B,),
                in_specs=[
                    pl.BlockSpec(memory_space=pltpu.MemorySpace.SMEM),  # taps
                    pl.BlockSpec((1, C, HW), lambda b: (b, 0, 0)),      # slab
                ],
                out_specs=pl.BlockSpec((1, C, HW), lambda b: (b, 0, 0)),
            ),
            compiler_params=pltpu.CompilerParams(
                dimension_semantics=("parallel",),
                vmem_limit_bytes=_VMEM_LIMIT),
        )(w, x3)
        return out3.reshape(B, C, H, W)

    # ------------------- Fallback: two streaming passes --------------------
    # Pass A: per-channel maxima.
    x3 = x.reshape(B, C, HW)
    cap_k = max(128, _TILE_CAP // (C * itemsize))
    TK = _pick_tile(HW, (8192, 4096, 2048, 1024, 512, 256, 128), cap=cap_k)
    nk = HW // TK

    maxes = pl.pallas_call(
        _eca_max_kernel,
        out_shape=jax.ShapeDtypeStruct((B, C, 1), jnp.float32),
        grid_spec=pltpu.PrefetchScalarGridSpec(
            num_scalar_prefetch=0,
            grid=(B, nk),
            in_specs=[pl.BlockSpec((1, C, TK), lambda b, k: (b, 0, k))],
            out_specs=pl.BlockSpec((1, C, 1), lambda b, k: (b, 0, 0)),
            scratch_shapes=[pltpu.VMEM((C, 1), jnp.float32)],
        ),
        compiler_params=pltpu.CompilerParams(
            dimension_semantics=("parallel", "arbitrary"),
            vmem_limit_bytes=_VMEM_LIMIT),
    )(x3)

    # Tiny epilogue in plain JAX: 3-tap zero-padded conv + sigmoid on (B, C).
    m = maxes.reshape(B, C)
    mp = jnp.pad(m, ((0, 0), (1, 1)))
    z = w[0] * mp[:, :-2] + w[1] * mp[:, 1:-1] + w[2] * mp[:, 2:]
    gate = jax.nn.sigmoid(z).reshape(B * C, 1)                 # f32

    # Pass B: apply the gate over lane-dense (B*C, HW) tiles.
    x2 = x.reshape(B * C, HW)
    TN = _pick_tile(HW, (8192, 4096, 2048, 1024, 512, 256, 128))
    cap_m = max(8, _TILE_CAP // (TN * itemsize))
    TM = _pick_tile(B * C, (1024, 512, 256, 128, 64, 32, 16, 8), cap=cap_m)

    out2 = pl.pallas_call(
        _eca_apply_kernel,
        out_shape=jax.ShapeDtypeStruct((B * C, HW), x.dtype),
        grid_spec=pltpu.PrefetchScalarGridSpec(
            num_scalar_prefetch=0,
            grid=(B * C // TM, HW // TN),
            in_specs=[
                pl.BlockSpec((TM, TN), lambda i, j: (i, j)),            # x
                pl.BlockSpec((TM, 1), lambda i, j: (i, 0)),             # gate
            ],
            out_specs=pl.BlockSpec((TM, TN), lambda i, j: (i, j)),
        ),
        compiler_params=pltpu.CompilerParams(
            dimension_semantics=("parallel", "parallel"),
            vmem_limit_bytes=_VMEM_LIMIT),
    )(x2, gate)

    return out2.reshape(B, C, H, W)


def eca_ref(x, conv_w):
    """Pure-JAX reference mirroring the PyTorch module."""
    y = jnp.max(x, axis=(2, 3))                                # (B, C)
    w = conv_w.reshape(3)
    yp = jnp.pad(y, ((0, 0), (1, 1)))
    z = w[0] * yp[:, :-2] + w[1] * yp[:, 1:-1] + w[2] * yp[:, 2:]
    g = jax.nn.sigmoid(z)
    return x * g[:, :, None, None]


if __name__ == "__main__":
    key = jax.random.PRNGKey(0)
    kx, kw = jax.random.split(key)

    # Small NCHW shapes consistent with the module.
    B, C, H, W = 2, 4, 16, 16
    x = jax.random.normal(kx, (B, C, H, W), dtype=jnp.float32)

    # Deterministic Conv1d(1, 1, k=3, bias=False) weight, shape (1, 1, 3),
    # PyTorch-style uniform(-sqrt(1/3), sqrt(1/3)) init.
    bound = (1.0 / 3.0) ** 0.5
    conv_w = jax.random.uniform(kw, (1, 1, 3), minval=-bound, maxval=bound,
                                dtype=jnp.float32)

    ref = eca_ref(x, conv_w)

    # Fused single-pass path (default for small slabs).
    out_fused = eca_forward(x, conv_w)
    jax.block_until_ready(out_fused)
    assert jnp.allclose(out_fused, ref, atol=1e-5, rtol=1e-5), "fused mismatch"

    # Two-pass streaming fallback (used for very large per-batch slabs).
    out_twopass = eca_forward(x, conv_w, use_fused=False)
    jax.block_until_ready(out_twopass)
    assert jnp.allclose(out_twopass, ref, atol=1e-5, rtol=1e-5), "two-pass mismatch"

    print("KERNEL_OK")
</pallas_src>

<mosaic_0001>
module attributes {stable_mosaic.version = 11 : i64} {
  func.func @_eca_fused_kernel(%arg0: i32, %arg1: memref<3xf32, #tpu.memory_space<smem>>, %arg2: memref<1x4x256xf32, #tpu.memory_space<vmem>>, %arg3: memref<1x4x256xf32, #tpu.memory_space<vmem>>) attributes {dimension_semantics = [#tpu.dimension_semantics<parallel>], iteration_bounds = array<i64: 2>, scalar_prefetch = 0 : i64, scratch_operands = 0 : i64, tpu.core_type = #tpu.core_type<tc>, window_params = [{transform_indices = @transform_0, window_bounds = array<i64: 3>}, {transform_indices = @transform_1, window_bounds = array<i64: 1, 4, 256>}, {transform_indices = @transform_2, window_bounds = array<i64: 1, 4, 256>}]} {
    %c0 = arith.constant 0 : index
    %c0_0 = arith.constant 0 : index
    %c0_1 = arith.constant 0 : index
    %0 = vector.load %arg2[%c0, %c0_0, %c0_1] : memref<1x4x256xf32, #tpu.memory_space<vmem>>, vector<1x4x256xf32>
    %1 = vector.shape_cast %0 : vector<1x4x256xf32> to vector<4x256xf32>
    %cst = arith.constant dense<0xFF800000> : vector<4xf32>
    %2 = vector.multi_reduction <maximumf>, %1, %cst [1] : vector<4x256xf32> to vector<4xf32>
    %3 = vector.shape_cast %2 : vector<4xf32> to vector<4x1xf32>
    %c0_2 = arith.constant 0 : index
    %4 = memref.load %arg1[%c0_2] : memref<3xf32, #tpu.memory_space<smem>>
    %c1 = arith.constant 1 : index
    %5 = memref.load %arg1[%c1] : memref<3xf32, #tpu.memory_space<smem>>
    %c2 = arith.constant 2 : index
    %6 = memref.load %arg1[%c2] : memref<3xf32, #tpu.memory_space<smem>>
    %7 = tpu.iota {dimensions = array<i32: 0>} : vector<4x1xi32>
    %c0_i32 = arith.constant 0 : i32
    %8 = vector.broadcast %c0_i32 : i32 to vector<4x1xi32>
    %9 = arith.cmpi eq, %7, %8 : vector<4x1xi32>
    %c1_i32 = arith.constant 1 : i32
    %10 = tpu.dynamic_rotate %3 by %c1_i32 dim 0 : vector<4x1xf32>, i32 -> vector<4x1xf32>
    %cst_3 = arith.constant 0.000000e+00 : f32
    %11 = vector.broadcast %cst_3 : f32 to vector<4x1xf32>
    %12 = arith.select %9, %11, %10 : vector<4x1xi1>, vector<4x1xf32>
    %c3_i32 = arith.constant 3 : i32
    %13 = vector.broadcast %c3_i32 : i32 to vector<4x1xi32>
    %14 = arith.cmpi eq, %7, %13 : vector<4x1xi32>
    %c3_i32_4 = arith.constant 3 : i32
    %15 = tpu.dynamic_rotate %3 by %c3_i32_4 dim 0 : vector<4x1xf32>, i32 -> vector<4x1xf32>
    %cst_5 = arith.constant 0.000000e+00 : f32
    %16 = vector.broadcast %cst_5 : f32 to vector<4x1xf32>
    %17 = arith.select %14, %16, %15 : vector<4x1xi1>, vector<4x1xf32>
    %18 = vector.broadcast %4 : f32 to vector<4x1xf32>
    %19 = arith.mulf %18, %12 : vector<4x1xf32>
    %20 = vector.broadcast %5 : f32 to vector<4x1xf32>
    %21 = arith.mulf %20, %3 : vector<4x1xf32>
    %22 = arith.addf %19, %21 : vector<4x1xf32>
    %23 = vector.broadcast %6 : f32 to vector<4x1xf32>
    %24 = arith.mulf %23, %17 : vector<4x1xf32>
    %25 = arith.addf %22, %24 : vector<4x1xf32>
    %26 = arith.negf %25 : vector<4x1xf32>
    %27 = math.exp %26 : vector<4x1xf32>
    %cst_6 = arith.constant 1.000000e+00 : f32
    %28 = vector.broadcast %cst_6 : f32 to vector<4x1xf32>
    %29 = arith.addf %28, %27 : vector<4x1xf32>
    %30 = arith.divf %28, %29 : vector<4x1xf32>
    %31 = vector.broadcast %30 : vector<4x1xf32> to vector<4x256xf32>
    %32 = arith.mulf %1, %31 : vector<4x256xf32>
    %c0_7 = arith.constant 0 : index
    %c0_8 = arith.constant 0 : index
    %c0_9 = arith.constant 0 : index
    %33 = vector.load %arg3[%c0_7, %c0_8, %c0_9] : memref<1x4x256xf32, #tpu.memory_space<vmem>>, vector<1x4x256xf32>
    %34 = vector.shape_cast %33 : vector<1x4x256xf32> to vector<4x256xf32>
    %35 = vector.shape_cast %32 : vector<4x256xf32> to vector<1x4x256xf32>
    tpu.vector_store %arg3[%c0_7, %c0_8, %c0_9], %35 {strides = array<i32>} : memref<1x4x256xf32, #tpu.memory_space<vmem>>, vector<1x4x256xf32>,
    return
  }
  func.func @transform_0(%arg0: i32) -> i32 {
    %c0_i32 = arith.constant 0 : i32
    %c0_i32_0 = arith.constant 0 : i32
    return %c0_i32 : i32
  }
  func.func @transform_1(%arg0: i32) -> (i32, i32, i32) {
    %c0_i32 = arith.constant 0 : i32
    %c0_i32_0 = arith.constant 0 : i32
    %c0_i32_1 = arith.constant 0 : i32
    return %arg0, %c0_i32, %c0_i32_0 : i32, i32, i32
  }
  func.func @transform_2(%arg0: i32) -> (i32, i32, i32) {
    %c0_i32 = arith.constant 0 : i32
    %c0_i32_0 = arith.constant 0 : i32
    %c0_i32_1 = arith.constant 0 : i32
    return %arg0, %c0_i32, %c0_i32_0 : i32, i32, i32
  }
}

</mosaic_0001>

<bundles_post_ra>
// kernel: eca_forward.1
= control target key start
LH: loop header
LB: loop body
LE: loop exit
PB: predicated region body
PF: predicated region fallthrough
CT: control target
= control target key end

     0   :  { %7 = vsyncpa [#allocation3], 0  ;;  %s372_s9 = smov 0   ;;  %s410_s0 = inlined_call_operand.vmem [shape: f32[3], index: 0, kind: input, shape index: {}]   ;;  %s411_s1 = inlined_call_operand.vmem [shape: f32[2,4,256], index: 1, kind: input, shape index: {}]   ;;  %s412_s2 = inlined_call_operand.vmem [shape: f32[2,4,256], index: 2, kind: output, shape index: {}]  }
   0x1 LB: > { %s282_s10 = sadd.s32 4294967295, %s352_s9   ;;  %p284_p0 = scmp.ge.s32.totalorder %s352_s9, 1  ;;  %s352_s9 = sphi %s372_s9, %s13_s9  }
   0x2   : > { %p91_p1 = scmp.lt.s32.totalorder %s352_s9, 3  ;;  %s104_s13 = sshll.u32 %s410_s0, 4  ;;  %s105_s13 = int_to_ptr.vmem [resolvable:$true] %s104_s13 }
   0x3   : > { %p308_p3 = scmp.eq.s32.totalorder %s282_s10, 0  ;;  %s327_s15 = scalar_lea.vmem %s105_s13, 16 }
   0x4   : > { %p383_p2 = pnand %p284_p0, %p91_p1  ;;  %p328_p6 = scmp.ne.s32.totalorder %s105_s13, %s327_s15 }
   0x5   : > { %p335_p10 = scmp.lt.s32.totalorder %s105_s13, %s105_s13  ;;  %p336_p11 = scmp.lt.s32.totalorder %s327_s15, %s327_s15 }
   0x6   : > { %p304_p4 = pneg %p383_p2 }
   0x7   : > { %p337_p12 = por %p336_p11, %p335_p10 }
   0x8   : > { %p305_p5 = pnand %p308_p3, %p304_p4 }
   0xa   : > { %p329_p7 = pneg %p305_p5 }
   0xc   : > { %p330_p8 = pnand %p329_p7, %p328_p6 }
   0xe   : > { %p331_p9 = pneg %p330_p8 }
  0x10   : > { %p338_p13 = pnand %p337_p12, %p331_p9 }
  0x12   : > { %341 = shalt.err (!%p338_p13)
}
  0x13   : > { %s354_s16 = smov [#allocation2]   ;;  %125 = sbr.rel (%p383_p2) target bundleno = 352 (0x160), region = 28 }
  0x14   : > { %307 = dma.vmem_to_smem (!%p305_p5), %s105_s13, 16, %s354_s16, [#allocation3]  }
  0x18   : > { %347 = dma.done.wait (%p308_p3), [#allocation3], 16  }
  0x19   : > { %349 = vsyncadd (%p308_p3), [#allocation3], 4294967280 }
  0x1a   : > { %131 = sfence }
  0x1b   : > { %p148_p0 = scmp.lt.s32.totalorder %s282_s10, 1  ;;  %vm162_vm0 = vcmask 1043456   ;;  %v355_v5 = vmov 0   ;;  %s168_s21 = sld [smem:[#allocation2]]  ;;  %v171_v6 = vlaneseq  ;;  %vm174_vm1 = vcmask 1047556  }
  0x1c   : > { %321 = vset.pattern.permute.xlu0 %v355_v5  ;;  %s293_s22 = sld [smem:[#allocation2 + $0x1]]  ;;  %v356_v29 = vmov 839922192  }
  0x1d   : > { %s415_s10 = smov (!%p148_p0, %s282_s10), 1  ;;  %s294_s23 = sld [smem:[#allocation2 + $0x2]]  ;;  %v172_v9 = vshrl.u32 %v171_v6, 7  ;;  %v206_v30 = vunpack.c.l.s4 %v356_v29 }
  0x1e   : > { %s298_s17 = sshll.u32 %s415_s10, 3 }
  0x1f   : > { %s152_s20 = scalar_lea.vmem %s411_s1, %s298_s17  ;;  %vm173_vm2 = vcmp.eq.s32.totalorder %v172_v9, 0  ;;  %vm183_vm3 = vcmp.eq.s32.totalorder %v172_v9, 3  ;;  %v207_v31 = vunpack.c.0.s8 %v206_v30  ;;  %s157_s26 = scalar_lea.vmem %s412_s2, %s298_s17 }
  0x20   : > { %v158_v0 = vld [vmem:[%s152_s20] sm:$0xff] }
  0x21   : > { %v160_v1 = vcombine.high %v158_v0, %v158_v0  ;;  %v163_v2 = vsel %vm162_vm0, %v158_v0, -inf  ;;  %v187_v13 = vstv %s168_s21  ;;  %v210_v32 = vsub.s32 %v207_v31, %v172_v9 }
  0x22   : > { %v189_v14 = vstv %s293_s22 }
  0x23   : > { %v164_v3 = vsel %vm162_vm0, %v160_v1, -inf  ;;  %v192_v17 = vstv %s294_s23 }
  0x24   : > { %v165_v4 = vmax.f32 %v163_v2, %v164_v3 }
  0x26   : > { %166 = vmax.xlane.f32.xlu0 %v165_v4 }
  0xaf   : > { %v167_v7 = vpop.xlane.xlu0 %166 }
  0xb0   : > { %v175_v8 = vrot.slane %v167_v7, 4  ;;  %v190_v21 = vmul.f32 %v189_v14, %v167_v7 }
  0xb2   : > { %v176_v10 = vsel %vm174_vm1, %v175_v8, %v167_v7 }
  0xb3   : > { %v177_v11 = vrot.slane %v176_v10, 4 }
  0xb5   : > { %v178_v12 = vsel %vm174_vm1, %v177_v11, %v167_v7 }
  0xb6   : > { %v180_v15 = vrot.slane %v178_v12, 3  ;;  %v184_v16 = vrot.slane %v178_v12, 1 }
  0xb8   : > { %v182_v18 = vsel %vm173_vm2, 0.0, %v180_v15  ;;  %v186_v19 = vsel %vm183_vm3, 0.0, %v184_v16 }
  0xb9   : > { %v188_v20 = vmul.f32 %v187_v13, %v182_v18  ;;  %v193_v23 = vmul.f32 %v192_v17, %v186_v19 }
  0xbb   : > { %v191_v22 = vadd.f32 %v190_v21, %v188_v20 }
  0xbd   : > { %v194_v24 = vadd.f32 %v193_v23, %v191_v22 }
  0xbf   : > { %v295_v25 = vmul.f32 -1.442695, %v194_v24 }
  0xc1   : > { %323 = vpow2.f32 %v295_v25 }
  0xce   : > { %v324_v26 = vpop.eup %323 }
  0xcf   : > { %v198_v27 = vadd.f32 1.0, %v324_v26 }
  0xd1   : > { %325 = vrcp.f32 %v198_v27 }
  0xde   : > { %v326_v28 = vpop.eup %325 }
  0xdf   : > { %203 = vperm.xlu0 %321, %v326_v28  }
 0x15a   : > { %v204_v33 = vpop.permute.xlu0 %203 }
 0x15b   : > { %v211_v34 = vrot.slane %v204_v33, %v210_v32 }
 0x15d   : > { %v213_v35 = vmul.f32 %v211_v34, %v158_v0 }
 0x15f   : > { %214 = vst [vmem:[%s157_s26] sm:$0xff] %v213_v35 }
 0x160 PF: > { %s13_s9 = sadd.s32 1, %s352_s9  }
 0x161   : > { %p10_p1 = scmp.ge.s32.totalorder %s13_s9, 4  }
 0x163   :  { %12 = sbr.rel (!%p10_p1) target bundleno = 1 (0x1), region = 63 }
 0x168   :  { %236 = vsyncpa [#allocation3], 1 }
 0x169   :  { %238 = vsyncpa [#allocation3 + $0x1], 1 }

</bundles_post_ra>
